<compile_context>
chip_gen: v6e
topology: v6e:2x2x1
jax: 0.10.0
libtpu: 0.0.40
codegen_flags: <defaults>
</compile_context>

<pallas_src>
import numpy as np
import jax
import jax.numpy as jnp
from jax.experimental import pallas as pl
from jax.experimental.pallas import tpu as pltpu

_BN_EPS = 1e-5


# --------------------------------------------------------------------------- #
# Pool (mean pooling) stage
# --------------------------------------------------------------------------- #
def _vmem_capacity_bytes() -> int:
    """Physical VMEM of the current TPU generation (fallback: v7x's 64 MiB)."""
    try:
        return int(pltpu.get_tpu_info().vmem_capacity_bytes)
    except Exception:
        return 64 * 1024 * 1024


def _pick_lane_group(n_images: int, pooled_hw: int) -> int:
    """Smallest divisor G of n_images with G * pooled_hw >= 128 (lane-dense)."""
    if pooled_hw >= 128:
        return 1
    for g in range(1, n_images + 1):
        if n_images % g == 0 and g * pooled_hw >= 128:
            return g
    return n_images


def _pick_tiles(rows, cols, ss, itemsize, tile_budget_bytes, target_in_tile_bytes):
    """Choose (row_tile, col_tile) for the (ss, rows, cols) input slab."""
    col_tile = cols
    if 2 * (ss + 1) * 8 * col_tile * itemsize > tile_budget_bytes and cols > 128:
        max_cols = tile_budget_bytes // (2 * (ss + 1) * 8 * itemsize)
        col_tile = min(cols, max(128, (max_cols // 128) * 128))

    max_rows = min(
        target_in_tile_bytes // (ss * col_tile * itemsize),
        tile_budget_bytes // (2 * (ss + 1) * col_tile * itemsize),
    )
    max_rows = max(8, int(max_rows))

    if rows <= max_rows:
        row_tile = rows
        # Keep >= 2 grid steps when there is enough work (two v7x TensorCores).
        if rows >= 16 and -(-cols // col_tile) < 2:
            row_tile = max(8, (rows // 2) // 8 * 8)
    else:
        row_tile = max(8, (max_rows // 8) * 8)
    return row_tile, col_tile


def _make_pool_kernel(weights, uniform):
    ss = len(weights)

    if uniform:
        w0 = float(weights[0])

        def pool_kernel(x_ref, o_ref):
            # x_ref: (ss, TR, TC) window-offset slabs; o_ref: (TR, TC)
            acc = x_ref[0].astype(jnp.float32)
            for p in range(1, ss):
                acc = acc + x_ref[p].astype(jnp.float32)
            o_ref[...] = acc * w0          # single folded 1/k**2 multiply
    else:

        def pool_kernel(x_ref, o_ref):
            acc = x_ref[0].astype(jnp.float32) * float(weights[0])
            for p in range(1, ss):
                acc = acc + x_ref[p].astype(jnp.float32) * float(weights[p])
            o_ref[...] = acc

    return pool_kernel


def pool_forward(x, kernel_weights, *, kernel_size: int, stride: int):
    """Mean pooling matching Pool.forward.  x: (B, C, H, W) -> (B, C, H/s, W/s)."""
    if kernel_size != stride:
        raise ValueError(
            "Pool kernel assumes kernel_size == stride (how ConvolutionNN uses it)")
    B, C, H, W = x.shape
    if H % stride != 0 or W % stride != 0:
        raise ValueError("Pooling layer dimension mismatch")

    s = stride
    Ho, Wo = H // s, W // s
    N, L, ss = B * C, Ho * Wo, s * s

    kw = np.asarray(kernel_weights, dtype=np.float32).reshape(kernel_size, kernel_size)
    weights = [float(kw[di, dj]) for di in range(s) for dj in range(s)]
    uniform = bool(np.all(kw == kw.flat[0]))

    # (B,C,H,W) -> (ss, N, L): window offset (di,dj) becomes the leading axis.
    xw = jnp.transpose(x.reshape(N, Ho, s, Wo, s), (2, 4, 0, 1, 3)).reshape(ss, N, L)

    # Pack G whole pooled images per row so the lane dim is >= 128.
    G = _pick_lane_group(N, L)
    R, Ccols = N // G, G * L
    xw = xw.reshape(ss, R, Ccols)

    itemsize = np.dtype(x.dtype).itemsize
    vmem_cap = _vmem_capacity_bytes()
    tile_budget = vmem_cap // 4
    TR, TC = _pick_tiles(R, Ccols, ss, itemsize, tile_budget,
                         target_in_tile_bytes=2 * 1024 * 1024)
    grid = (pl.cdiv(R, TR), pl.cdiv(Ccols, TC))

    in_bytes = ss * R * Ccols * itemsize
    out_bytes = R * Ccols * 4
    cost = pl.CostEstimate(flops=ss * R * Ccols, transcendentals=0,
                           bytes_accessed=in_bytes + out_bytes)

    out2d = pl.pallas_call(
        _make_pool_kernel(weights, uniform),
        out_shape=jax.ShapeDtypeStruct((R, Ccols), jnp.float32),
        grid_spec=pltpu.PrefetchScalarGridSpec(
            num_scalar_prefetch=0,
            grid=grid,
            in_specs=[pl.BlockSpec((ss, TR, TC), lambda i, j: (0, i, j))],
            out_specs=pl.BlockSpec((TR, TC), lambda i, j: (i, j)),
        ),
        compiler_params=pltpu.CompilerParams(
            dimension_semantics=("parallel", "parallel"),
            vmem_limit_bytes=int(min(vmem_cap // 2, 64 * 1024 * 1024)),
        ),
        cost_estimate=cost,
    )(xw)

    # (R, G*L) is a contiguous regrouping of (N, L); undo it, restore NCHW.
    return out2d.reshape(B, C, Ho, Wo)


# --------------------------------------------------------------------------- #
# ConvolutionLayer + BatchNorm2d + ReLU (fused, one MXU matmul per layer)
# --------------------------------------------------------------------------- #
def _im2col(x, k, padding):
    """NCHW -> (Cin*k*k, B*OH*OW) window-tap matrix (trace-time layout plumbing)."""
    B, C, H, W = x.shape
    if padding:
        x = jnp.pad(x, ((0, 0), (0, 0), (padding, padding), (padding, padding)))
    Hp, Wp = H + 2 * padding, W + 2 * padding
    OH, OW = Hp - k + 1, Wp - k + 1
    taps = []
    for c in range(C):
        for di in range(k):
            for dj in range(k):
                taps.append(x[:, c, di:di + OH, dj:dj + OW])
    patches = jnp.stack(taps, axis=0).reshape(C * k * k, B * OH * OW)
    return patches, OH, OW


def _conv_bn_relu_kernel(w_ref, shift_ref, p_ref, o_ref):
    # w_ref: (Cout, K), shift_ref: (Cout, 1), p_ref: (K, TN), o_ref: (Cout, TN)
    z = jnp.dot(w_ref[...], p_ref[...], preferred_element_type=jnp.float32)
    o_ref[...] = jnp.maximum(z + shift_ref[...], 0.0)


def conv_bn_relu_forward(x, w, b, gamma, beta, mean, var, *, padding):
    """ConvolutionLayer + BatchNorm2d (inference) + ReLU.  x: (B, Cin, H, W)."""
    B, Cin, H, W = x.shape
    Cout, _, k, _ = w.shape

    patches, OH, OW = _im2col(x, k, padding)             # (K, N), N = B*OH*OW
    K, N = patches.shape

    # Fold BN (inference) scale/shift and the conv bias into the matmul.
    scale = gamma / jnp.sqrt(var + _BN_EPS)              # (Cout,)
    w_eff = w.reshape(Cout, K) * scale[:, None]          # (Cout, K)
    shift = ((b - mean) * scale + beta)[:, None]         # (Cout, 1)

    TN = N if N <= 4096 else 2048                        # lane-dense; mult of 128 when tiled
    grid = (pl.cdiv(N, TN),)
    cost = pl.CostEstimate(flops=2 * Cout * K * N, transcendentals=0,
                           bytes_accessed=(Cout * K + K * N + Cout * N + Cout) * 4)

    out = pl.pallas_call(
        _conv_bn_relu_kernel,
        out_shape=jax.ShapeDtypeStruct((Cout, N), jnp.float32),
        grid_spec=pltpu.PrefetchScalarGridSpec(
            num_scalar_prefetch=0,
            grid=grid,
            in_specs=[pl.BlockSpec((Cout, K), lambda j: (0, 0)),
                      pl.BlockSpec((Cout, 1), lambda j: (0, 0)),
                      pl.BlockSpec((K, TN), lambda j: (0, j))],
            out_specs=pl.BlockSpec((Cout, TN), lambda j: (0, j)),
        ),
        compiler_params=pltpu.CompilerParams(dimension_semantics=("parallel",)),
        cost_estimate=cost,
    )(w_eff.astype(jnp.float32), shift.astype(jnp.float32),
      patches.astype(jnp.float32))

    # (Cout, B*OH*OW) -> NCHW
    return out.reshape(Cout, B, OH, OW).transpose(1, 0, 2, 3)


# --------------------------------------------------------------------------- #
# Flatten + Linear(64,30) + ReLU + Linear(30,15) + ReLU + Linear(15,T) head
# --------------------------------------------------------------------------- #
def _mlp_kernel(x_ref, w1_ref, b1_ref, w2_ref, b2_ref, w3_ref, b3_ref, o_ref):
    h = jnp.dot(x_ref[...], w1_ref[...], preferred_element_type=jnp.float32) + b1_ref[...]
    h = jnp.maximum(h, 0.0)
    # TODO(synk): Dropout(p=0.2) is identity in inference mode.
    h = jnp.dot(h, w2_ref[...], preferred_element_type=jnp.float32) + b2_ref[...]
    h = jnp.maximum(h, 0.0)
    o_ref[...] = jnp.dot(h, w3_ref[...], preferred_element_type=jnp.float32) + b3_ref[...]


def mlp_forward(x, w1, b1, w2, b2, w3, b3):
    B, F = x.shape
    T = w3.shape[1]
    TB = B if B <= 512 else 256
    grid = (pl.cdiv(B, TB),)
    full = lambda i: (0, 0)
    return pl.pallas_call(
        _mlp_kernel,
        out_shape=jax.ShapeDtypeStruct((B, T), jnp.float32),
        grid_spec=pltpu.PrefetchScalarGridSpec(
            num_scalar_prefetch=0,
            grid=grid,
            in_specs=[pl.BlockSpec((TB, F), lambda i: (i, 0)),
                      pl.BlockSpec(w1.shape, full),
                      pl.BlockSpec(b1.shape, full),
                      pl.BlockSpec(w2.shape, full),
                      pl.BlockSpec(b2.shape, full),
                      pl.BlockSpec(w3.shape, full),
                      pl.BlockSpec(b3.shape, full)],
            out_specs=pl.BlockSpec((TB, T), lambda i: (i, 0)),
        ),
        compiler_params=pltpu.CompilerParams(dimension_semantics=("parallel",)),
    )(x, w1, b1, w2, b2, w3, b3)


# --------------------------------------------------------------------------- #
# Full ConvolutionNN forward
# --------------------------------------------------------------------------- #
def convolution_nn_forward(x, params):
    y = conv_bn_relu_forward(x, params["c1_w"], params["c1_b"],
                             params["bn1_gamma"], params["bn1_beta"],
                             params["bn1_mean"], params["bn1_var"], padding=2)
    y = pool_forward(y, params["pool_w"], kernel_size=2, stride=2)
    y = conv_bn_relu_forward(y, params["c2_w"], params["c2_b"],
                             params["bn2_gamma"], params["bn2_beta"],
                             params["bn2_mean"], params["bn2_var"], padding=0)
    y = pool_forward(y, params["pool_w"], kernel_size=2, stride=2)
    feats = y.reshape(y.shape[0], -1)                 # nn.Flatten(1, -1): (B, 16*2*2)
    return mlp_forward(feats, params["fc1_w"], params["fc1_b"],
                       params["fc2_w"], params["fc2_b"],
                       params["fc3_w"], params["fc3_b"])


# --------------------------------------------------------------------------- #
# Pure-JAX reference of the same semantics
# --------------------------------------------------------------------------- #
def reference_forward(x, params):
    def conv(x, w, b, padding):
        y = jax.lax.conv_general_dilated(
            x, w, window_strides=(1, 1),
            padding=[(padding, padding), (padding, padding)],
            dimension_numbers=("NCHW", "OIHW", "NCHW"))
        return y + b[None, :, None, None]

    def bn(y, gamma, beta, mean, var):
        y = (y - mean[None, :, None, None]) / jnp.sqrt(var[None, :, None, None] + _BN_EPS)
        return y * gamma[None, :, None, None] + beta[None, :, None, None]

    def pool(y):
        B, C, H, W = y.shape
        return y.reshape(B, C, H // 2, 2, W // 2, 2).mean(axis=(3, 5))

    y = jnp.maximum(bn(conv(x, params["c1_w"], params["c1_b"], 2),
                       params["bn1_gamma"], params["bn1_beta"],
                       params["bn1_mean"], params["bn1_var"]), 0.0)
    y = pool(y)
    y = jnp.maximum(bn(conv(y, params["c2_w"], params["c2_b"], 0),
                       params["bn2_gamma"], params["bn2_beta"],
                       params["bn2_mean"], params["bn2_var"]), 0.0)
    y = pool(y)
    h = y.reshape(y.shape[0], -1)
    h = jnp.maximum(h @ params["fc1_w"] + params["fc1_b"], 0.0)
    h = jnp.maximum(h @ params["fc2_w"] + params["fc2_b"], 0.0)
    return h @ params["fc3_w"] + params["fc3_b"]


if __name__ == "__main__":
    # Architecture constants from the spec.  Linear(64, 30) forces 8x8 input:
    # 8 -(k3,pad2)-> 10 -(pool2)-> 5 -(k2)-> 4 -(pool2)-> 2; 16*2*2 = 64.
    B, Cin, H, W = 8, 1, 8, 8
    C1, K1, C2, K2 = 6, 3, 16, 2
    TARGET_SIZE = 10          # target_size is data-dependent in the spec; pick 10.

    key = jax.random.PRNGKey(0)
    ks = jax.random.split(key, 20)

    def randn(k, shape, scale=1.0):
        return jax.random.normal(k, shape, dtype=jnp.float32) * scale

    s1 = (Cin * K1) ** -0.5
    s2 = (C1 * K2) ** -0.5
    params = {
        "c1_w": randn(ks[0], (C1, Cin, K1, K1), s1),
        "c1_b": randn(ks[1], (C1,), s1),
        "bn1_gamma": 1.0 + 0.1 * randn(ks[2], (C1,)),
        "bn1_beta": 0.1 * randn(ks[3], (C1,)),
        "bn1_mean": 0.1 * randn(ks[4], (C1,)),
        "bn1_var": jax.random.uniform(ks[5], (C1,), jnp.float32, 0.5, 1.5),
        "c2_w": randn(ks[6], (C2, C1, K2, K2), s2),
        "c2_b": randn(ks[7], (C2,), s2),
        "bn2_gamma": 1.0 + 0.1 * randn(ks[8], (C2,)),
        "bn2_beta": 0.1 * randn(ks[9], (C2,)),
        "bn2_mean": 0.1 * randn(ks[10], (C2,)),
        "bn2_var": jax.random.uniform(ks[11], (C2,), jnp.float32, 0.5, 1.5),
        "fc1_w": randn(ks[12], (64, 30), 64 ** -0.5),
        "fc1_b": randn(ks[13], (1, 30), 64 ** -0.5),
        "fc2_w": randn(ks[14], (30, 15), 30 ** -0.5),
        "fc2_b": randn(ks[15], (1, 15), 30 ** -0.5),
        "fc3_w": randn(ks[16], (15, TARGET_SIZE), 15 ** -0.5),
        "fc3_b": randn(ks[17], (1, TARGET_SIZE), 15 ** -0.5),
        "pool_w": np.ones((2, 2), np.float32) / 4.0,   # Pool(kernel_type='mean')
    }

    x = jax.random.normal(ks[18], (B, Cin, H, W), dtype=jnp.float32)
    x = x / jnp.max(x)        # data = data / torch.max(data)

    fwd = jax.jit(lambda inp: convolution_nn_forward(inp, params))
    out = jax.block_until_ready(fwd(x))

    ref = reference_forward(x, params)
    assert out.shape == (B, TARGET_SIZE), out.shape
    err = float(jnp.max(jnp.abs(out - ref)))
    assert jnp.allclose(out, ref, atol=1e-4, rtol=1e-4), f"mismatch vs reference: {err}"

    print("KERNEL_OK")
</pallas_src>

<mosaic_0001>
module attributes {stable_mosaic.version = 11 : i64} {
  func.func @_conv_bn_relu_kernel(%arg0: i32, %arg1: memref<6x9xf32, #tpu.memory_space<vmem>>, %arg2: memref<6x1xf32, #tpu.memory_space<vmem>>, %arg3: memref<9x800xf32, #tpu.memory_space<vmem>>, %arg4: memref<6x800xf32, #tpu.memory_space<vmem>>) attributes {dimension_semantics = [#tpu.dimension_semantics<parallel>], iteration_bounds = array<i64: 1>, scalar_prefetch = 0 : i64, scratch_operands = 0 : i64, tpu.core_type = #tpu.core_type<tc>, window_params = [{pipeline_mode = #tpu.pipeline_mode<synchronous>, transform_indices = @transform_0, window_bounds = array<i64: 6, 9>}, {pipeline_mode = #tpu.pipeline_mode<synchronous>, transform_indices = @transform_1, window_bounds = array<i64: 6, 1>}, {transform_indices = @transform_2, window_bounds = array<i64: 9, 800>}, {transform_indices = @transform_3, window_bounds = array<i64: 6, 800>}]} {
    %c0 = arith.constant 0 : index
    %c0_0 = arith.constant 0 : index
    %0 = vector.load %arg1[%c0, %c0_0] : memref<6x9xf32, #tpu.memory_space<vmem>>, vector<6x9xf32>
    %c0_1 = arith.constant 0 : index
    %c0_2 = arith.constant 0 : index
    %1 = vector.load %arg3[%c0_1, %c0_2] : memref<9x800xf32, #tpu.memory_space<vmem>>, vector<9x800xf32>
    %cst = arith.constant dense<0.000000e+00> : vector<6x800xf32>
    %2 = tpu.matmul %0, %1, %cst {dimension_numbers = #tpu.dot_dimension_numbers<[1], [0], [0], [1], [0, 0, 1, 1], [], []>} : vector<6x9xf32>, vector<9x800xf32>, vector<6x800xf32> -> vector<6x800xf32>
    %c0_3 = arith.constant 0 : index
    %c0_4 = arith.constant 0 : index
    %3 = vector.load %arg2[%c0_3, %c0_4] : memref<6x1xf32, #tpu.memory_space<vmem>>, vector<6x1xf32>
    %4 = vector.broadcast %3 : vector<6x1xf32> to vector<6x800xf32>
    %5 = arith.addf %2, %4 : vector<6x800xf32>
    %cst_5 = arith.constant 0.000000e+00 : f32
    %6 = vector.broadcast %cst_5 : f32 to vector<6x800xf32>
    %7 = arith.maximumf %5, %6 : vector<6x800xf32>
    %c0_6 = arith.constant 0 : index
    %c0_7 = arith.constant 0 : index
    %8 = vector.load %arg4[%c0_6, %c0_7] : memref<6x800xf32, #tpu.memory_space<vmem>>, vector<6x800xf32>
    tpu.vector_store %arg4[%c0_6, %c0_7], %7 {strides = array<i32>} : memref<6x800xf32, #tpu.memory_space<vmem>>, vector<6x800xf32>,
    return
  }
  func.func @transform_0(%arg0: i32) -> (i32, i32) {
    %c0_i32 = arith.constant 0 : i32
    %c0_i32_0 = arith.constant 0 : i32
    %c0_i32_1 = arith.constant 0 : i32
    return %c0_i32, %c0_i32_0 : i32, i32
  }
  func.func @transform_1(%arg0: i32) -> (i32, i32) {
    %c0_i32 = arith.constant 0 : i32
    %c0_i32_0 = arith.constant 0 : i32
    %c0_i32_1 = arith.constant 0 : i32
    return %c0_i32, %c0_i32_0 : i32, i32
  }
  func.func @transform_2(%arg0: i32) -> (i32, i32) {
    %c0_i32 = arith.constant 0 : i32
    %c0_i32_0 = arith.constant 0 : i32
    return %c0_i32, %arg0 : i32, i32
  }
  func.func @transform_3(%arg0: i32) -> (i32, i32) {
    %c0_i32 = arith.constant 0 : i32
    %c0_i32_0 = arith.constant 0 : i32
    return %c0_i32, %arg0 : i32, i32
  }
}

module attributes {stable_mosaic.version = 11 : i64} {
  func.func @pool_kernel(%arg0: i32, %arg1: i32, %arg2: memref<4x8x150xf32, #tpu.memory_space<vmem>>, %arg3: memref<8x150xf32, #tpu.memory_space<vmem>>) attributes {dimension_semantics = [#tpu.dimension_semantics<parallel>, #tpu.dimension_semantics<parallel>], iteration_bounds = array<i64: 1, 1>, scalar_prefetch = 0 : i64, scratch_operands = 0 : i64, tpu.core_type = #tpu.core_type<tc>, window_params = [{transform_indices = @transform_0, window_bounds = array<i64: 4, 8, 150>}, {transform_indices = @transform_1, window_bounds = array<i64: 8, 150>}]} {
    %c0 = arith.constant 0 : index
    %c0_0 = arith.constant 0 : index
    %c0_1 = arith.constant 0 : index
    %0 = vector.load %arg2[%c0, %c0_0, %c0_1] : memref<4x8x150xf32, #tpu.memory_space<vmem>>, vector<1x8x150xf32>
    %1 = vector.shape_cast %0 : vector<1x8x150xf32> to vector<8x150xf32>
    %c1 = arith.constant 1 : index
    %c0_2 = arith.constant 0 : index
    %c0_3 = arith.constant 0 : index
    %2 = vector.load %arg2[%c1, %c0_2, %c0_3] : memref<4x8x150xf32, #tpu.memory_space<vmem>>, vector<1x8x150xf32>
    %3 = vector.shape_cast %2 : vector<1x8x150xf32> to vector<8x150xf32>
    %4 = arith.addf %1, %3 : vector<8x150xf32>
    %c2 = arith.constant 2 : index
    %c0_4 = arith.constant 0 : index
    %c0_5 = arith.constant 0 : index
    %5 = vector.load %arg2[%c2, %c0_4, %c0_5] : memref<4x8x150xf32, #tpu.memory_space<vmem>>, vector<1x8x150xf32>
    %6 = vector.shape_cast %5 : vector<1x8x150xf32> to vector<8x150xf32>
    %7 = arith.addf %4, %6 : vector<8x150xf32>
    %c3 = arith.constant 3 : index
    %c0_6 = arith.constant 0 : index
    %c0_7 = arith.constant 0 : index
    %8 = vector.load %arg2[%c3, %c0_6, %c0_7] : memref<4x8x150xf32, #tpu.memory_space<vmem>>, vector<1x8x150xf32>
    %9 = vector.shape_cast %8 : vector<1x8x150xf32> to vector<8x150xf32>
    %10 = arith.addf %7, %9 : vector<8x150xf32>
    %cst = arith.constant 2.500000e-01 : f32
    %11 = vector.broadcast %cst : f32 to vector<8x150xf32>
    %12 = arith.mulf %10, %11 : vector<8x150xf32>
    %c0_8 = arith.constant 0 : index
    %c0_9 = arith.constant 0 : index
    %13 = vector.load %arg3[%c0_8, %c0_9] : memref<8x150xf32, #tpu.memory_space<vmem>>, vector<8x150xf32>
    tpu.vector_store %arg3[%c0_8, %c0_9], %12 {strides = array<i32>} : memref<8x150xf32, #tpu.memory_space<vmem>>, vector<8x150xf32>,
    return
  }
  func.func @transform_0(%arg0: i32, %arg1: i32) -> (i32, i32, i32) {
    %c0_i32 = arith.constant 0 : i32
    %c0_i32_0 = arith.constant 0 : i32
    return %c0_i32, %arg0, %arg1 : i32, i32, i32
  }
  func.func @transform_1(%arg0: i32, %arg1: i32) -> (i32, i32) {
    %c0_i32 = arith.constant 0 : i32
    return %arg0, %arg1 : i32, i32
  }
}

module attributes {stable_mosaic.version = 11 : i64} {
  func.func @_conv_bn_relu_kernel(%arg0: i32, %arg1: memref<16x24xf32, #tpu.memory_space<vmem>>, %arg2: memref<16x1xf32, #tpu.memory_space<vmem>>, %arg3: memref<24x128xf32, #tpu.memory_space<vmem>>, %arg4: memref<16x128xf32, #tpu.memory_space<vmem>>) attributes {dimension_semantics = [#tpu.dimension_semantics<parallel>], iteration_bounds = array<i64: 1>, scalar_prefetch = 0 : i64, scratch_operands = 0 : i64, tpu.core_type = #tpu.core_type<tc>, window_params = [{pipeline_mode = #tpu.pipeline_mode<synchronous>, transform_indices = @transform_0, window_bounds = array<i64: 16, 24>}, {pipeline_mode = #tpu.pipeline_mode<synchronous>, transform_indices = @transform_1, window_bounds = array<i64: 16, 1>}, {transform_indices = @transform_2, window_bounds = array<i64: 24, 128>}, {transform_indices = @transform_3, window_bounds = array<i64: 16, 128>}]} {
    %c0 = arith.constant 0 : index
    %c0_0 = arith.constant 0 : index
    %0 = vector.load %arg1[%c0, %c0_0] : memref<16x24xf32, #tpu.memory_space<vmem>>, vector<16x24xf32>
    %c0_1 = arith.constant 0 : index
    %c0_2 = arith.constant 0 : index
    %1 = vector.load %arg3[%c0_1, %c0_2] : memref<24x128xf32, #tpu.memory_space<vmem>>, vector<24x128xf32>
    %cst = arith.constant dense<0.000000e+00> : vector<16x128xf32>
    %2 = tpu.matmul %0, %1, %cst {dimension_numbers = #tpu.dot_dimension_numbers<[1], [0], [0], [1], [0, 0, 1, 1], [], []>} : vector<16x24xf32>, vector<24x128xf32>, vector<16x128xf32> -> vector<16x128xf32>
    %c0_3 = arith.constant 0 : index
    %c0_4 = arith.constant 0 : index
    %3 = vector.load %arg2[%c0_3, %c0_4] : memref<16x1xf32, #tpu.memory_space<vmem>>, vector<16x1xf32>
    %4 = vector.broadcast %3 : vector<16x1xf32> to vector<16x128xf32>
    %5 = arith.addf %2, %4 : vector<16x128xf32>
    %cst_5 = arith.constant 0.000000e+00 : f32
    %6 = vector.broadcast %cst_5 : f32 to vector<16x128xf32>
    %7 = arith.maximumf %5, %6 : vector<16x128xf32>
    %c0_6 = arith.constant 0 : index
    %c0_7 = arith.constant 0 : index
    %8 = vector.load %arg4[%c0_6, %c0_7] : memref<16x128xf32, #tpu.memory_space<vmem>>, vector<16x128xf32>
    tpu.vector_store %arg4[%c0_6, %c0_7], %7 {strides = array<i32>} : memref<16x128xf32, #tpu.memory_space<vmem>>, vector<16x128xf32>,
    return
  }
  func.func @transform_0(%arg0: i32) -> (i32, i32) {
    %c0_i32 = arith.constant 0 : i32
    %c0_i32_0 = arith.constant 0 : i32
    %c0_i32_1 = arith.constant 0 : i32
    return %c0_i32, %c0_i32_0 : i32, i32
  }
  func.func @transform_1(%arg0: i32) -> (i32, i32) {
    %c0_i32 = arith.constant 0 : i32
    %c0_i32_0 = arith.constant 0 : i32
    %c0_i32_1 = arith.constant 0 : i32
    return %c0_i32, %c0_i32_0 : i32, i32
  }
  func.func @transform_2(%arg0: i32) -> (i32, i32) {
    %c0_i32 = arith.constant 0 : i32
    %c0_i32_0 = arith.constant 0 : i32
    return %c0_i32, %arg0 : i32, i32
  }
  func.func @transform_3(%arg0: i32) -> (i32, i32) {
    %c0_i32 = arith.constant 0 : i32
    %c0_i32_0 = arith.constant 0 : i32
    return %c0_i32, %arg0 : i32, i32
  }
}

module attributes {stable_mosaic.version = 11 : i64} {
  func.func @pool_kernel(%arg0: i32, %arg1: i32, %arg2: memref<4x4x128xf32, #tpu.memory_space<vmem>>, %arg3: memref<4x128xf32, #tpu.memory_space<vmem>>) attributes {dimension_semantics = [#tpu.dimension_semantics<parallel>, #tpu.dimension_semantics<parallel>], iteration_bounds = array<i64: 1, 1>, scalar_prefetch = 0 : i64, scratch_operands = 0 : i64, tpu.core_type = #tpu.core_type<tc>, window_params = [{transform_indices = @transform_0, window_bounds = array<i64: 4, 4, 128>}, {transform_indices = @transform_1, window_bounds = array<i64: 4, 128>}]} {
    %c0 = arith.constant 0 : index
    %c0_0 = arith.constant 0 : index
    %c0_1 = arith.constant 0 : index
    %0 = vector.load %arg2[%c0, %c0_0, %c0_1] : memref<4x4x128xf32, #tpu.memory_space<vmem>>, vector<1x4x128xf32>
    %1 = vector.shape_cast %0 : vector<1x4x128xf32> to vector<4x128xf32>
    %c1 = arith.constant 1 : index
    %c0_2 = arith.constant 0 : index
    %c0_3 = arith.constant 0 : index
    %2 = vector.load %arg2[%c1, %c0_2, %c0_3] : memref<4x4x128xf32, #tpu.memory_space<vmem>>, vector<1x4x128xf32>
    %3 = vector.shape_cast %2 : vector<1x4x128xf32> to vector<4x128xf32>
    %4 = arith.addf %1, %3 : vector<4x128xf32>
    %c2 = arith.constant 2 : index
    %c0_4 = arith.constant 0 : index
    %c0_5 = arith.constant 0 : index
    %5 = vector.load %arg2[%c2, %c0_4, %c0_5] : memref<4x4x128xf32, #tpu.memory_space<vmem>>, vector<1x4x128xf32>
    %6 = vector.shape_cast %5 : vector<1x4x128xf32> to vector<4x128xf32>
    %7 = arith.addf %4, %6 : vector<4x128xf32>
    %c3 = arith.constant 3 : index
    %c0_6 = arith.constant 0 : index
    %c0_7 = arith.constant 0 : index
    %8 = vector.load %arg2[%c3, %c0_6, %c0_7] : memref<4x4x128xf32, #tpu.memory_space<vmem>>, vector<1x4x128xf32>
    %9 = vector.shape_cast %8 : vector<1x4x128xf32> to vector<4x128xf32>
    %10 = arith.addf %7, %9 : vector<4x128xf32>
    %cst = arith.constant 2.500000e-01 : f32
    %11 = vector.broadcast %cst : f32 to vector<4x128xf32>
    %12 = arith.mulf %10, %11 : vector<4x128xf32>
    %c0_8 = arith.constant 0 : index
    %c0_9 = arith.constant 0 : index
    %13 = vector.load %arg3[%c0_8, %c0_9] : memref<4x128xf32, #tpu.memory_space<vmem>>, vector<4x128xf32>
    tpu.vector_store %arg3[%c0_8, %c0_9], %12 {strides = array<i32>} : memref<4x128xf32, #tpu.memory_space<vmem>>, vector<4x128xf32>,
    return
  }
  func.func @transform_0(%arg0: i32, %arg1: i32) -> (i32, i32, i32) {
    %c0_i32 = arith.constant 0 : i32
    %c0_i32_0 = arith.constant 0 : i32
    return %c0_i32, %arg0, %arg1 : i32, i32, i32
  }
  func.func @transform_1(%arg0: i32, %arg1: i32) -> (i32, i32) {
    %c0_i32 = arith.constant 0 : i32
    return %arg0, %arg1 : i32, i32
  }
}

module attributes {stable_mosaic.version = 11 : i64} {
  func.func @_mlp_kernel(%arg0: i32, %arg1: memref<8x64xf32, #tpu.memory_space<vmem>>, %arg2: memref<64x30xf32, #tpu.memory_space<vmem>>, %arg3: memref<1x30xf32, #tpu.memory_space<vmem>>, %arg4: memref<30x15xf32, #tpu.memory_space<vmem>>, %arg5: memref<1x15xf32, #tpu.memory_space<vmem>>, %arg6: memref<15x10xf32, #tpu.memory_space<vmem>>, %arg7: memref<1x10xf32, #tpu.memory_space<vmem>>, %arg8: memref<8x10xf32, #tpu.memory_space<vmem>>) attributes {dimension_semantics = [#tpu.dimension_semantics<parallel>], iteration_bounds = array<i64: 1>, scalar_prefetch = 0 : i64, scratch_operands = 0 : i64, tpu.core_type = #tpu.core_type<tc>, window_params = [{transform_indices = @transform_0, window_bounds = array<i64: 8, 64>}, {pipeline_mode = #tpu.pipeline_mode<synchronous>, transform_indices = @transform_1, window_bounds = array<i64: 64, 30>}, {pipeline_mode = #tpu.pipeline_mode<synchronous>, transform_indices = @transform_2, window_bounds = array<i64: 1, 30>}, {pipeline_mode = #tpu.pipeline_mode<synchronous>, transform_indices = @transform_3, window_bounds = array<i64: 30, 15>}, {pipeline_mode = #tpu.pipeline_mode<synchronous>, transform_indices = @transform_4, window_bounds = array<i64: 1, 15>}, {pipeline_mode = #tpu.pipeline_mode<synchronous>, transform_indices = @transform_5, window_bounds = array<i64: 15, 10>}, {pipeline_mode = #tpu.pipeline_mode<synchronous>, transform_indices = @transform_6, window_bounds = array<i64: 1, 10>}, {transform_indices = @transform_7, window_bounds = array<i64: 8, 10>}]} {
    %c0 = arith.constant 0 : index
    %c0_0 = arith.constant 0 : index
    %0 = vector.load %arg1[%c0, %c0_0] : memref<8x64xf32, #tpu.memory_space<vmem>>, vector<8x64xf32>
    %c0_1 = arith.constant 0 : index
    %c0_2 = arith.constant 0 : index
    %1 = vector.load %arg2[%c0_1, %c0_2] : memref<64x30xf32, #tpu.memory_space<vmem>>, vector<64x30xf32>
    %cst = arith.constant dense<0.000000e+00> : vector<8x30xf32>
    %2 = tpu.matmul %0, %1, %cst {dimension_numbers = #tpu.dot_dimension_numbers<[1], [0], [0], [1], [0, 0, 1, 1], [], []>} : vector<8x64xf32>, vector<64x30xf32>, vector<8x30xf32> -> vector<8x30xf32>
    %c0_3 = arith.constant 0 : index
    %c0_4 = arith.constant 0 : index
    %3 = vector.load %arg3[%c0_3, %c0_4] : memref<1x30xf32, #tpu.memory_space<vmem>>, vector<1x30xf32>
    %4 = vector.broadcast %3 : vector<1x30xf32> to vector<8x30xf32>
    %5 = arith.addf %2, %4 : vector<8x30xf32>
    %cst_5 = arith.constant 0.000000e+00 : f32
    %6 = vector.broadcast %cst_5 : f32 to vector<8x30xf32>
    %7 = arith.maximumf %5, %6 : vector<8x30xf32>
    %c0_6 = arith.constant 0 : index
    %c0_7 = arith.constant 0 : index
    %8 = vector.load %arg4[%c0_6, %c0_7] : memref<30x15xf32, #tpu.memory_space<vmem>>, vector<30x15xf32>
    %cst_8 = arith.constant dense<0.000000e+00> : vector<8x15xf32>
    %9 = tpu.matmul %7, %8, %cst_8 {dimension_numbers = #tpu.dot_dimension_numbers<[1], [0], [0], [1], [0, 0, 1, 1], [], []>} : vector<8x30xf32>, vector<30x15xf32>, vector<8x15xf32> -> vector<8x15xf32>
    %c0_9 = arith.constant 0 : index
    %c0_10 = arith.constant 0 : index
    %10 = vector.load %arg5[%c0_9, %c0_10] : memref<1x15xf32, #tpu.memory_space<vmem>>, vector<1x15xf32>
    %11 = vector.broadcast %10 : vector<1x15xf32> to vector<8x15xf32>
    %12 = arith.addf %9, %11 : vector<8x15xf32>
    %cst_11 = arith.constant 0.000000e+00 : f32
    %13 = vector.broadcast %cst_11 : f32 to vector<8x15xf32>
    %14 = arith.maximumf %12, %13 : vector<8x15xf32>
    %c0_12 = arith.constant 0 : index
    %c0_13 = arith.constant 0 : index
    %15 = vector.load %arg6[%c0_12, %c0_13] : memref<15x10xf32, #tpu.memory_space<vmem>>, vector<15x10xf32>
    %cst_14 = arith.constant dense<0.000000e+00> : vector<8x10xf32>
    %16 = tpu.matmul %14, %15, %cst_14 {dimension_numbers = #tpu.dot_dimension_numbers<[1], [0], [0], [1], [0, 0, 1, 1], [], []>} : vector<8x15xf32>, vector<15x10xf32>, vector<8x10xf32> -> vector<8x10xf32>
    %c0_15 = arith.constant 0 : index
    %c0_16 = arith.constant 0 : index
    %17 = vector.load %arg7[%c0_15, %c0_16] : memref<1x10xf32, #tpu.memory_space<vmem>>, vector<1x10xf32>
    %18 = vector.broadcast %17 : vector<1x10xf32> to vector<8x10xf32>
    %19 = arith.addf %16, %18 : vector<8x10xf32>
    %c0_17 = arith.constant 0 : index
    %c0_18 = arith.constant 0 : index
    %20 = vector.load %arg8[%c0_17, %c0_18] : memref<8x10xf32, #tpu.memory_space<vmem>>, vector<8x10xf32>
    tpu.vector_store %arg8[%c0_17, %c0_18], %19 {strides = array<i32>} : memref<8x10xf32, #tpu.memory_space<vmem>>, vector<8x10xf32>,
    return
  }
  func.func @transform_0(%arg0: i32) -> (i32, i32) {
    %c0_i32 = arith.constant 0 : i32
    %c0_i32_0 = arith.constant 0 : i32
    return %arg0, %c0_i32 : i32, i32
  }
  func.func @transform_1(%arg0: i32) -> (i32, i32) {
    %c0_i32 = arith.constant 0 : i32
    %c0_i32_0 = arith.constant 0 : i32
    %c0_i32_1 = arith.constant 0 : i32
    return %c0_i32, %c0_i32_0 : i32, i32
  }
  func.func @transform_2(%arg0: i32) -> (i32, i32) {
    %c0_i32 = arith.constant 0 : i32
    %c0_i32_0 = arith.constant 0 : i32
    %c0_i32_1 = arith.constant 0 : i32
    return %c0_i32, %c0_i32_0 : i32, i32
  }
  func.func @transform_3(%arg0: i32) -> (i32, i32) {
    %c0_i32 = arith.constant 0 : i32
    %c0_i32_0 = arith.constant 0 : i32
    %c0_i32_1 = arith.constant 0 : i32
    return %c0_i32, %c0_i32_0 : i32, i32
  }
  func.func @transform_4(%arg0: i32) -> (i32, i32) {
    %c0_i32 = arith.constant 0 : i32
    %c0_i32_0 = arith.constant 0 : i32
    %c0_i32_1 = arith.constant 0 : i32
    return %c0_i32, %c0_i32_0 : i32, i32
  }
  func.func @transform_5(%arg0: i32) -> (i32, i32) {
    %c0_i32 = arith.constant 0 : i32
    %c0_i32_0 = arith.constant 0 : i32
    %c0_i32_1 = arith.constant 0 : i32
    return %c0_i32, %c0_i32_0 : i32, i32
  }
  func.func @transform_6(%arg0: i32) -> (i32, i32) {
    %c0_i32 = arith.constant 0 : i32
    %c0_i32_0 = arith.constant 0 : i32
    %c0_i32_1 = arith.constant 0 : i32
    return %c0_i32, %c0_i32_0 : i32, i32
  }
  func.func @transform_7(%arg0: i32) -> (i32, i32) {
    %c0_i32 = arith.constant 0 : i32
    %c0_i32_0 = arith.constant 0 : i32
    return %arg0, %c0_i32 : i32, i32
  }
}

</mosaic_0001>

<bundles_post_ra>
// kernel: _lambda_.5
= control target key start
LH: loop header
LB: loop body
LE: loop exit
PB: predicated region body
PF: predicated region fallthrough
CT: control target
= control target key end

     0   :  { %vm39_vm0 = vcmask 1040384   ;;  %v388_v3 = vmov 0.0   ;;  %vm35_vm1 = vcmask 72704   ;;  %vm389_vm2 = vmmov 0   ;;  %s491_s2 = inlined_call_operand.vmem [shape: f32[9,800], index: 2, kind: input, shape index: {}]   ;;  %s492_s0 = inlined_call_operand.vmem [shape: f32[6,9], index: 0, kind: input, shape index: {}]   ;;  %s493_s1 = inlined_call_operand.vmem [shape: f32[6,1], index: 1, kind: input, shape index: {}]   ;;  %s494_s3 = inlined_call_operand.vmem [shape: f32[6,800], index: 3, kind: output, shape index: {}]  }
   0x1   :  { %v23_v0 = vld [vmem:[%s491_s2 + $0x40] sm:$0x1]  ;;  %v22_v1 = vld [vmem:[%s491_s2 + $0x38] sm:$0x1]  ;;  %v25_v2 = vld [vmem:[%s491_s2 + $0x50] sm:$0x1]  ;;  %125 = vmatprep.mubr.f32.mxu0 %v388_v3  ;;  %196 = vmatprep.mubr.f32.mxu1 %v388_v3 }
   0x2   :  { %363 = vmatprep.subr.msk.mxu0 %vm39_vm0, %v23_v0  ;;  %366 = vmatprep.subr.msk.mxu1 %vm39_vm0, %v25_v2  ;;  %v16_v4 = vld [vmem:[%s491_s2 + $0x8] sm:$0xff]  ;;  %v15_v6 = vld [vmem:[%s491_s2] sm:$0xff]  ;;  %v18_v7 = vld [vmem:[%s491_s2 + $0x18] sm:$0xff]  ;;  %v390_v17 = vmov 0   ;;  %vm357_vm3 = vcmask 259072  }
   0x3   :  { %v24_v5 = vld [vmem:[%s491_s2 + $0x48] sm:$0x1]  ;;  %364 = vmatpush1.msk.msra.mxu0 %vm39_vm0, %v22_v1  ;;  %v14_v8 = vld [vmem:[%s492_s0] sm:$0x3f]  ;;  %v17_v9 = vld [vmem:[%s491_s2 + $0x10] sm:$0xff]  ;;  %387 = vset.pattern.permute.xlu0 %v390_v17 }
   0x4   :  { %367 = vmatpush1.msk.msra.mxu1 %vm39_vm0, %v24_v5  ;;  %91 = vmatprep.subr.mxu0 %v16_v4  ;;  %v27_v10 = vld [vmem:[%s491_s2 + $0x60] sm:$0x1]  ;;  %v26_v11 = vld [vmem:[%s491_s2 + $0x58] sm:$0x1]  ;;  %v20_v12 = vld [vmem:[%s491_s2 + $0x28] sm:$0xff] }
   0x5   :  { %162 = vmatprep.subr.mxu1 %v18_v7  ;;  %92 = vmatpush1.msra.mxu0 %v15_v6  ;;  %v28_v13 = vld [vmem:[%s491_s2 + $0x68] sm:$0x1]  ;;  %v19_v14 = vld [vmem:[%s491_s2 + $0x20] sm:$0xff]  ;;  %v21_v15 = vld [vmem:[%s491_s2 + $0x30] sm:$0xff] }
   0x6   :  { %163 = vmatpush1.msra.mxu1 %v17_v9  ;;  %365 = vmatmul.mubr.msk.f32.vlgmr.msra.gmra.mxu0 %vm35_vm1, %v14_v8  ;;  %v29_v16 = vld [vmem:[%s493_s1] sm:$0x3f] }
   0x7   :  { %369 = vmatprep.subr.msk.mxu0 %vm39_vm0, %v27_v10  ;;  %368 = vmatmul.mubr.msk.f32.vlgmr.msra.gmra.mxu1 %vm35_vm1, %v14_v8 }
   0x8   :  { %370 = vmatpush1.msk.msra.mxu0 %vm39_vm0, %v26_v11  ;;  %377 = vmatprep.subr.mxu1 %v388_v3 }
   0x9   :  { %233 = vmatprep.subr.mxu0 %v20_v12  ;;  %378 = vmatpush3.msk.msra.mxu1 %vm39_vm0, %v28_v13 }
   0xa   :  { %234 = vmatpush1.msra.mxu0 %v19_v14  ;;  %267 = vmatprep.mubr.f32.mxu0 %v388_v3 }
   0xb   :  { %379 = vmatprep.subr.mxu1 %v388_v3  ;;  %371 = vmatmul.mubr.msk.f32.vlgmr.msra.gmra.mxu0 %vm35_vm1, %v14_v8 }
   0xc   :  { %380 = vmatpush3.msra.mxu1 %v21_v15  ;;  %381 = vmatprep.mubr.msk.f32.mxu1 %vm389_vm2, %v388_v3 }
   0xd   :  { %382 = vmatmul.mubr.msk.f32.vlgmr.msra.gmra.mxu1 %vm35_vm1, %v14_v8  ;;  %32 = vperm.xlu0 %387, %v29_v16  }
  0x88   :  { %v33_v18 = vpop.permute.xlu0 %32 }
  0xc6   :  { %v127_v19 = vpop.f32.mrf.mxu0 }
  0xc7   :  { %v128_v20 = vadd.f32 %v127_v19, %v33_v18  ;;  %v198_v21 = vpop.f32.mrf.mxu1 }
  0xc8   :  { %v199_v22 = vadd.f32 %v198_v21, %v33_v18  ;;  %v129_v23 = vpop.f32.mrf.mxu0 }
  0xc9   :  { %v344_v24 = vmax.f32 %v128_v20, 0.0  ;;  %v130_v25 = vadd.f32 %v129_v23, %v33_v18  ;;  %v200_v26 = vpop.f32.mrf.mxu1 }
  0xca   :  { %v346_v27 = vmax.f32 %v199_v22, 0.0  ;;  %v201_v28 = vadd.f32 %v200_v26, %v33_v18 }
  0xcb   :  { %351 = vst [vmem:[%s494_s3] sm:$0x3f] %v344_v24  ;;  %v345_v29 = vmax.f32 %v130_v25, 0.0  ;;  %v269_v30 = vpop.f32.mrf.mxu0 }
  0xcc   :  { %353 = vst [vmem:[%s494_s3 + $0x10] sm:$0x3f] %v346_v27  ;;  %v347_v31 = vmax.f32 %v201_v28, 0.0  ;;  %v270_v32 = vadd.f32 %v269_v30, %v33_v18 }
  0xcd   :  { %352 = vst [vmem:[%s494_s3 + $0x8] sm:$0x3f] %v345_v29  ;;  %v340_v33 = vpop.f32.mrf.mxu1  ;;  %v271_v34 = vpop.f32.mrf.mxu0 }
  0xce   :  { %354 = vst [vmem:[%s494_s3 + $0x18] sm:$0x3f] %v347_v31  ;;  %v348_v35 = vmax.f32 %v270_v32, 0.0  ;;  %v341_v36 = vadd.f32 %v340_v33, %v33_v18  ;;  %v272_v37 = vadd.f32 %v271_v34, %v33_v18 }
  0xcf   :  { %v383_v38 = vpop.f32.mrf.mxu1 }
  0xd0   :  { %355 = vst [vmem:[%s494_s3 + $0x20] sm:$0x3f] %v348_v35  ;;  %v350_v39 = vmax.f32 %v341_v36, 0.0  ;;  %v349_v40 = vmax.f32 %v272_v37, 0.0 }
  0xd2   :  { %358 = vst.msk [vmem:[%s494_s3 + $0x30] sm:$0x3f] %vm357_vm3, %v350_v39  ;;  %356 = vst [vmem:[%s494_s3 + $0x28] sm:$0x3f] %v349_v40 }

// kernel: _lambda_.6
= control target key start
LH: loop header
LB: loop body
LE: loop exit
PB: predicated region body
PF: predicated region fallthrough
CT: control target
= control target key end

     0   :  { %vm28_vm0 = vcmask 179200   ;;  %s80_s0 = inlined_call_operand.vmem [shape: f32[4,8,150], index: 0, kind: input, shape index: {}]   ;;  %s81_s1 = inlined_call_operand.vmem [shape: f32[8,150], index: 1, kind: output, shape index: {}]  }
   0x1   :  { %v8_v0 = vld [vmem:[%s80_s0] sm:$0xff]  ;;  %v34_v1 = vld [vmem:[%s80_s0 + $0x10] sm:$0xff]  ;;  %v9_v4 = vld [vmem:[%s80_s0 + $0x8] sm:$0xff] }
   0x2   :  { %v36_v2 = vld [vmem:[%s80_s0 + $0x20] sm:$0xff]  ;;  %v13_v3 = vadd.f32 %v34_v1, %v8_v0  ;;  %v35_v5 = vld [vmem:[%s80_s0 + $0x18] sm:$0xff]  ;;  %v38_v6 = vld [vmem:[%s80_s0 + $0x30] sm:$0xff] }
   0x3   :  { %v14_v7 = vadd.f32 %v35_v5, %v9_v4  ;;  %v37_v8 = vld [vmem:[%s80_s0 + $0x28] sm:$0xff]  ;;  %v39_v10 = vld [vmem:[%s80_s0 + $0x38] sm:$0xff] }
   0x4   :  { %v18_v9 = vadd.f32 %v36_v2, %v13_v3 }
   0x5   :  { %v19_v11 = vadd.f32 %v37_v8, %v14_v7 }
   0x6   :  { %v23_v12 = vadd.f32 %v38_v6, %v18_v9 }
   0x7   :  { %v24_v13 = vadd.f32 %v39_v10, %v19_v11 }
   0x8   :  { %v25_v14 = vmul.f32 0.25, %v23_v12 }
   0x9   :  { %v26_v15 = vmul.f32 0.25, %v24_v13 }
   0xa   :  { %27 = vst [vmem:[%s81_s1] sm:$0xff] %v25_v14 }
   0xb   :  { %29 = vst.msk [vmem:[%s81_s1 + $0x8] sm:$0xff] %vm28_vm0, %v26_v15 }

// kernel: _lambda_.7
= control target key start
LH: loop header
LB: loop body
LE: loop exit
PB: predicated region body
PF: predicated region fallthrough
CT: control target
= control target key end

     0   :  { %vm31_vm0 = vcmask 195584   ;;  %v139_v2 = vmov 0   ;;  %s189_s2 = inlined_call_operand.vmem [shape: f32[24,128], index: 2, kind: input, shape index: {}]   ;;  %s190_s0 = inlined_call_operand.vmem [shape: f32[16,24], index: 0, kind: input, shape index: {}]   ;;  %s191_s1 = inlined_call_operand.vmem [shape: f32[16,1], index: 1, kind: input, shape index: {}]   ;;  %s192_s3 = inlined_call_operand.vmem [shape: f32[16,128], index: 3, kind: output, shape index: {}]  }
   0x1   :  { %v18_v0 = vld [vmem:[%s189_s2 + $0x10] sm:$0xff]  ;;  %v17_v1 = vld [vmem:[%s189_s2 + $0x8] sm:$0xff]  ;;  %138 = vset.pattern.permute.xlu0 %v139_v2  ;;  %v14_v3 = vld [vmem:[%s190_s0] sm:$0xff] }
   0x2   :  { %128 = vmatprep.subr.mxu0 %v18_v0  ;;  %v19_v4 = vld [vmem:[%s191_s1] sm:$0xff]  ;;  %134 = vmatprep.mubr.msk.f32.mxu0 %vm31_vm0, %v14_v3  ;;  %v15_v6 = vld [vmem:[%s190_s0 + $0x8] sm:$0xff] }
   0x3   :  { %129 = vmatpush3.msra.mxu0 %v18_v0  ;;  %v16_v5 = vld [vmem:[%s189_s2] sm:$0xff]  ;;  %23 = vperm.xlu0 %138, %v19_v4   ;;  %v20_v7 = vld [vmem:[%s191_s1 + $0x8] sm:$0xff] }
   0x4   :  { %130 = vmatprep.subr.mxu0 %v17_v1 }
   0x5   :  { %131 = vmatpush3.msra.mxu0 %v17_v1 }
   0x6   :  { %132 = vmatprep.subr.mxu0 %v16_v5 }
   0x7   :  { %133 = vmatpush3.msra.mxu0 %v16_v5  ;;  %28 = vperm.xlu0 %138, %v20_v7  }
   0x8   :  { %135 = vmatmul.mubr.msk.f32.vlgmr.msra.gmra.mxu0 %vm31_vm0, %v15_v6 }
  0x7e   :  { %v24_v8 = vpop.permute.xlu0 %23 }
  0x82   :  { %v29_v9 = vpop.permute.xlu0 %28 }
  0xc8   :  { %v136_v10 = vpop.f32.mrf.mxu0 }
  0xc9   :  { %v110_v11 = vadd.f32 %v136_v10, %v29_v9 }
  0xca   :  { %v104_v12 = vpop.f32.mrf.mxu0 }
  0xcb   :  { %v114_v13 = vmax.f32 %v110_v11, 0.0  ;;  %v105_v14 = vadd.f32 %v104_v12, %v24_v8 }
  0xcd   :  { %116 = vst [vmem:[%s192_s3 + $0x8] sm:$0xff] %v114_v13  ;;  %v113_v15 = vmax.f32 %v105_v14, 0.0 }
  0xcf   :  { %115 = vst [vmem:[%s192_s3] sm:$0xff] %v113_v15 }

// kernel: _lambda_.8
= control target key start
LH: loop header
LB: loop body
LE: loop exit
PB: predicated region body
PF: predicated region fallthrough
CT: control target
= control target key end

     0   :  { %s52_s0 = inlined_call_operand.vmem [shape: f32[4,4,128], index: 0, kind: input, shape index: {}]   ;;  %s53_s1 = inlined_call_operand.vmem [shape: f32[4,128], index: 1, kind: output, shape index: {}]  }
   0x1   :  { %v8_v0 = vld [vmem:[%s52_s0] sm:$0xf]  ;;  %v24_v1 = vld [vmem:[%s52_s0 + $0x4] sm:$0xf]  ;;  %v25_v2 = vld [vmem:[%s52_s0 + $0x8] sm:$0xf] }
   0x2   :  { %v11_v3 = vadd.f32 %v24_v1, %v8_v0  ;;  %v26_v4 = vld [vmem:[%s52_s0 + $0xc] sm:$0xf] }
   0x4   :  { %v14_v5 = vadd.f32 %v25_v2, %v11_v3 }
   0x6   :  { %v17_v6 = vadd.f32 %v26_v4, %v14_v5 }
   0x8   :  { %v18_v7 = vmul.f32 0.25, %v17_v6 }
   0xa   :  { %19 = vst [vmem:[%s53_s1] sm:$0xf] %v18_v7 }

// kernel: _lambda_.9
= control target key start
LH: loop header
LB: loop body
LE: loop exit
PB: predicated region body
PF: predicated region fallthrough
CT: control target
= control target key end

     0   :  { %v398_v1 = vmov 0.0   ;;  %vm399_vm0 = vmmov 0   ;;  %vm133_vm1 = vcmask 1045504   ;;  %s501_s0 = inlined_call_operand.vmem [shape: f32[8,64], index: 0, kind: input, shape index: {}]   ;;  %s502_s1 = inlined_call_operand.vmem [shape: f32[64,30], index: 1, kind: input, shape index: {}]   ;;  %s503_s2 = inlined_call_operand.vmem [shape: f32[1,30], index: 2, kind: input, shape index: {}]   ;;  %s504_s3 = inlined_call_operand.vmem [shape: f32[30,15], index: 3, kind: input, shape index: {}]   ;;  %s505_s4 = inlined_call_operand.vmem [shape: f32[1,15], index: 4, kind: input, shape index: {}]   ;;  %s506_s5 = inlined_call_operand.vmem [shape: f32[15,10], index: 5, kind: input, shape index: {}]   ;;  %s507_s6 = inlined_call_operand.vmem [shape: f32[1,10], index: 6, kind: input, shape index: {}]   ;;  %s508_s7 = inlined_call_operand.hbm [shape: f32[8,10], index: 7, kind: output, shape index: {}]  }
   0x1   :  { %v35_v0 = vld [vmem:[%s502_s1 + $0x38] sm:$0xff]  ;;  %336 = vmatprep.subr.mxu0 %v398_v1  ;;  %v34_v2 = vld [vmem:[%s502_s1 + $0x30] sm:$0xff]  ;;  %352 = vmatprep.mubr.msk.f32.mxu0 %vm399_vm0, %v398_v1  ;;  %v33_v3 = vld [vmem:[%s502_s1 + $0x28] sm:$0xff] }
   0x2   :  { %337 = vmatpush3.msra.mxu0 %v35_v0  ;;  %355 = vmatprep.subr.mxu1 %v398_v1  ;;  %v121_v4 = vld [vmem:[%s504_s3 + $0x18] sm:$0x3f] }
   0x3   :  { %338 = vmatprep.subr.mxu0 %v398_v1  ;;  %363 = vmatprep.mubr.msk.f32.mxu1 %vm399_vm0, %v398_v1 }
   0x4   :  { %12 = vsyncpa [#allocation3], 0  ;;  %339 = vmatpush3.msra.mxu0 %v34_v2  ;;  %356 = vmatpush3.msk.msra.mxu1 %vm133_vm1, %v121_v4  ;;  %v32_v5 = vld [vmem:[%s502_s1 + $0x20] sm:$0xff]  ;;  %v31_v6 = vld [vmem:[%s502_s1 + $0x18] sm:$0xff]  ;;  %vm43_vm2 = vcmask 523264   ;;  %vm129_vm3 = vcmask 244736  }
   0x5   :  { %340 = vmatprep.subr.mxu0 %v398_v1  ;;  %357 = vmatprep.subr.mxu1 %v398_v1  ;;  %v30_v7 = vld [vmem:[%s502_s1 + $0x10] sm:$0xff]  ;;  %v29_v8 = vld [vmem:[%s502_s1 + $0x8] sm:$0xff]  ;;  %v28_v9 = vld [vmem:[%s502_s1] sm:$0xff]  ;;  %vm221_vm4 = vcmask 1046528   ;;  %vm217_vm5 = vcmask 121856   ;;  %s400_s10 = smov [#allocation2]  }
   0x6   :  { %341 = vmatpush3.msra.mxu0 %v33_v3  ;;  %v27_v10 = vld [vmem:[%s501_s0] sm:$0xff]  ;;  %v120_v11 = vld [vmem:[%s504_s3 + $0x10] sm:$0xff]  ;;  %v119_v12 = vld [vmem:[%s504_s3 + $0x8] sm:$0xff]  ;;  %s303_s11 = sshll.u32 %s400_s10, 4  ;;  %vm295_vm6 = vcmask 80896   ;;  %s304_s11 = int_to_ptr.vmem [resolvable:$true] %s303_s11 }
   0x7   :  { %342 = vmatprep.subr.mxu0 %v398_v1  ;;  %358 = vmatpush3.msra.mxu1 %v120_v11  ;;  %v118_v13 = vld [vmem:[%s504_s3] sm:$0xff]  ;;  %v209_v19 = vld [vmem:[%s506_s5 + $0x8] sm:$0x7f]  ;;  %p381_p1 = scmp.lt.s32.totalorder %s304_s11, %s304_s11 }
   0x8   :  { %343 = vmatpush3.msra.mxu0 %v32_v5  ;;  %359 = vmatprep.subr.mxu1 %v398_v1  ;;  %v311_v14 = vld [vmem:[%s503_s2] ss:$0 sm:$0xff] }
   0x9   :  { %344 = vmatprep.subr.mxu0 %v398_v1  ;;  %360 = vmatpush3.msra.mxu1 %v119_v12  ;;  %v208_v20 = vld [vmem:[%s506_s5] sm:$0xff]  ;;  %s376_s5 = scalar_lea.vmem %s304_s11, 128 }
   0xa   :  { %345 = vmatpush3.msra.mxu0 %v31_v6  ;;  %361 = vmatprep.subr.mxu1 %v398_v1  ;;  %v313_v21 = vld [vmem:[%s505_s4] ss:$0 sm:$0xff]  ;;  %p377_p0 = scmp.ne.s32.totalorder %s304_s11, %s376_s5  ;;  %p382_p2 = scmp.lt.s32.totalorder %s376_s5, %s376_s5 }
   0xb   :  { %346 = vmatprep.subr.mxu0 %v398_v1  ;;  %362 = vmatpush3.msra.mxu1 %v118_v13  ;;  %v316_v26 = vld [vmem:[%s507_s6] ss:$0 sm:$0xff] }
   0xc   :  { %347 = vmatpush3.msra.mxu0 %v30_v7  ;;  %366 = vmatprep.subr.mxu1 %v398_v1  ;;  %p383_p3 = por %p382_p2, %p381_p1 }
   0xd   :  { %348 = vmatprep.subr.mxu0 %v398_v1 }
   0xe   :  { %349 = vmatpush3.msra.mxu0 %v29_v8  ;;  %p384_p4 = pnand %p383_p3, %p377_p0 }
   0xf   :  { %350 = vmatprep.subr.mxu0 %v398_v1 }
  0x10   :  { %351 = vmatpush3.msra.mxu0 %v28_v9 }
  0x11   :  { %353 = vmatmul.mubr.msk.f32.vlgmr.msra.gmra.mxu0 %vm43_vm2, %v27_v10 }
  0xd1   :  { %v113_v15 = vpop.f32.mrf.mxu0 }
  0xd2   :  { %v114_v16 = vadd.f32 %v311_v14, %v113_v15 }
  0xd3   :  { %v354_v17 = vpop.f32.mrf.mxu0 }
  0xd4   :  { %v117_v18 = vmax.f32 %v114_v16, 0.0 }
  0xd6   :  { %364 = vmatmul.mubr.msk.f32.vlgmr.msra.gmra.mxu1 %vm129_vm3, %v117_v18 }
  0xd7   :  { %370 = vmatprep.mubr.msk.f32.mxu1 %vm399_vm0, %v398_v1  ;;  %367 = vmatpush3.msk.msra.mxu1 %vm221_vm4, %v209_v19 }
  0xd8   :  { %368 = vmatprep.subr.mxu1 %v398_v1 }
  0xd9   :  { %369 = vmatpush3.msra.mxu1 %v208_v20 }
 0x196   :  { %v203_v22 = vpop.f32.mrf.mxu1 }
 0x197   :  { %v204_v23 = vadd.f32 %v313_v21, %v203_v22 }
 0x198   :  { %v365_v24 = vpop.f32.mrf.mxu1 }
 0x199   :  { %v207_v25 = vmax.f32 %v204_v23, 0.0 }
 0x19b   :  { %371 = vmatmul.mubr.msk.f32.vlgmr.msra.gmra.mxu1 %vm217_vm5, %v207_v25 }
 0x25b   :  { %v291_v27 = vpop.f32.mrf.mxu1 }
 0x25c   :  { %v292_v28 = vadd.f32 %v316_v26, %v291_v27 }
 0x25d   :  { %v372_v29 = vpop.f32.mrf.mxu1 }
 0x25e   :  { %296 = vst.msk [vmem:[#allocation2] sm:$0xff] %vm295_vm6, %v292_v28 }
 0x25f   :  { %387 = shalt.err (!%p384_p4)
}
 0x260   :  { %306 = dma.vmem_to_hbm [thread:$0]  %s304_s11, 128, %s508_s7, [#allocation3]  }
 0x261   :  { %396 = dma.done.wait [#allocation3], 128  }
 0x262   :  { %397 = vsyncadd [#allocation3], 4294967168 }
 0x263   :  { %310 = vsyncpa [#allocation3], 1 }

</bundles_post_ra>
